<compile_context>
chip_gen: v6e
topology: v6e:2x2x1
jax: 0.10.0
libtpu: 0.0.40
codegen_flags: <defaults>
</compile_context>

<pallas_src>
import jax
import jax.numpy as jnp
from jax.experimental import pallas as pl
from jax.experimental.pallas import tpu as pltpu


def c_net_kernel(x_ref, wa_ref, ba_ref, w2_ref, o_ref):
    """One grid step = TB batch elements.

    x_ref : (TB, C, HWp) input block (f32), spatial flattened + lane-padded
    wa_ref: (C, R)       folded (conv+pool) weight pre-multiplied into fc1^T
    ba_ref: (1, R)       folded conv bias pushed through fc1^T
    w2_ref: (R, C)       fc2 weight (transposed), no bias
    o_ref : (TB, C, HWp)
    """
    x = x_ref[...]                                                    # (TB, C, HWp)

    # Sum over the (zero-padded) flattened spatial axis; the 1/HW mean and the
    # 0.5 pair-average of the "viewed" pooling are folded into wa/ba host-side.
    sum_x = jnp.sum(x, axis=-1)                                       # (TB, C)

    # fc path: ReLU(sum_x @ Wa + ba) @ W2 -> Sigmoid
    h1 = jnp.maximum(
        jnp.dot(sum_x, wa_ref[...], preferred_element_type=jnp.float32)
        + ba_ref[...], 0.0)                                           # (TB, R)
    s = jax.nn.sigmoid(
        jnp.dot(h1, w2_ref[...], preferred_element_type=jnp.float32)) # (TB, C)

    # Channel-wise scaling, broadcast over the (padded) spatial lanes.
    o_ref[...] = x * s[:, :, None]


def _pick_batch_tile(B, per_batch_bytes, target_bytes=4 << 20):
    """Batch elements per grid step: ~target_bytes of x per block, divisor of B,
    and (when B >= 2) at least 2 grid steps so both megacore halves get work."""
    tb = max(1, min(B, target_bytes // max(per_batch_bytes, 1)))
    if B >= 2:
        tb = min(tb, max(1, B // 2))
    while B % tb:
        tb -= 1
    return tb


def c_net_pallas(x, w_conv, b_conv, w_fc1, w_fc2):
    """x: (B, C, H, W) f32; w_conv: (2C, C); b_conv: (2C,); w_fc1: (R, C);
    w_fc2: (C, R). Returns (B, C, H, W) f32."""
    B, C, H, W = x.shape
    HW = H * W
    R = w_fc1.shape[0]

    # Pad flattened spatial axis to a multiple of 128 for lane-dense vld/vst.
    HWp = ((HW + 127) // 128) * 128
    x_flat = x.reshape(B, C, HW).astype(jnp.float32)
    if HWp != HW:
        x_flat = jnp.pad(x_flat, ((0, 0), (0, 0), (0, HWp - HW)))

    # Host-side algebraic folding:
    #   pooled pair i  ==  (0.5/HW) * (W_e[i] + W_o[i]) . sum_HW(x) + 0.5*(b_e[i] + b_o[i])
    # and, since fc1 follows with no nonlinearity in between, pre-multiply the
    # folded conv into fc1:
    w_fold = (0.5 / HW) * (w_conv[0::2] + w_conv[1::2])               # (C, C)
    b_fold = 0.5 * (b_conv[0::2] + b_conv[1::2])                      # (C,)
    wa = jnp.asarray(w_fold.T @ w_fc1.T, dtype=jnp.float32)           # (C, R)
    ba = jnp.asarray((b_fold @ w_fc1.T).reshape(1, R), jnp.float32)   # (1, R)
    w2_t = jnp.asarray(w_fc2.T, dtype=jnp.float32)                    # (R, C)

    per_batch_bytes = C * HWp * 4
    TB = _pick_batch_tile(B, per_batch_bytes)
    grid = (B // TB,)

    weight_bytes = 4 * (wa.size + ba.size + w2_t.size)
    block_bytes = TB * per_batch_bytes
    # in + out blocks, double buffered, plus resident weights and headroom.
    vmem_limit = int(min(max(4 * block_bytes + weight_bytes + (4 << 20), 16 << 20),
                         48 << 20))

    cost = pl.CostEstimate(
        flops=int(B * (2 * C * HWp + 4 * C * R)),
        transcendentals=int(B * C),
        bytes_accessed=int(2 * B * C * HWp * 4 + weight_bytes),
    )

    full = lambda shape: pl.BlockSpec(shape, lambda b: tuple(0 for _ in shape))

    out_flat = pl.pallas_call(
        c_net_kernel,
        out_shape=jax.ShapeDtypeStruct((B, C, HWp), jnp.float32),
        grid=grid,
        in_specs=[
            pl.BlockSpec((TB, C, HWp), lambda b: (b, 0, 0)),   # x batch tile
            full((C, R)),                                      # folded conv+fc1 weight
            full((1, R)),                                      # folded bias through fc1
            full((R, C)),                                      # fc2 weight^T
        ],
        out_specs=pl.BlockSpec((TB, C, HWp), lambda b: (b, 0, 0)),
        compiler_params=pltpu.CompilerParams(
            dimension_semantics=("parallel",),
            vmem_limit_bytes=vmem_limit),
        cost_estimate=cost,
    )(x_flat, wa, ba, w2_t)

    if HWp != HW:
        out_flat = out_flat[:, :, :HW]
    return out_flat.reshape(B, C, H, W)


def c_net_ref(x, w_conv, b_conv, w_fc1, w_fc2):
    """Pure-JAX reference matching the PyTorch forward exactly."""
    B, C, H, W = x.shape
    conv = jnp.einsum("oc,bchw->bohw", w_conv, x) + b_conv[None, :, None, None]
    y = conv.reshape(B, C, -1).mean(axis=-1)                  # view(b,c,-1,1) + avg_pool
    h1 = jnp.maximum(y @ w_fc1.T, 0.0)
    s = jax.nn.sigmoid(h1 @ w_fc2.T)
    return x * s[:, :, None, None]


if __name__ == "__main__":
    # Small shapes consistent with the module: channel=32, reduction=4, 1x1 conv.
    B, C, H, W = 2, 32, 16, 16
    REDUCTION = 4
    R = C // REDUCTION

    key = jax.random.PRNGKey(0)
    k_x, k_wc, k_bc, k_w1, k_w2 = jax.random.split(key, 5)

    x = jax.random.normal(k_x, (B, C, H, W), dtype=jnp.float32)

    # Deterministic synthetic parameters (shapes match nn.Conv2d / nn.Linear).
    w_conv = jax.random.normal(k_wc, (2 * C, C), dtype=jnp.float32) * 0.05  # Conv2d weight (2C,C,1,1) squeezed
    b_conv = jax.random.normal(k_bc, (2 * C,), dtype=jnp.float32) * 0.05    # Conv2d bias
    w_fc1 = jax.random.normal(k_w1, (R, C), dtype=jnp.float32) * 0.1        # Linear(C -> C//r), no bias
    w_fc2 = jax.random.normal(k_w2, (C, R), dtype=jnp.float32) * 0.1        # Linear(C//r -> C), no bias

    out = c_net_pallas(x, w_conv, b_conv, w_fc1, w_fc2)
    out = jax.block_until_ready(out)

    ref = c_net_ref(x, w_conv, b_conv, w_fc1, w_fc2)
    assert out.shape == (B, C, H, W)
    # Folding changes only fp32 summation order; tolerance stays tight.
    assert jnp.allclose(out, ref, rtol=1e-4, atol=1e-4), "mismatch vs reference"

    print("KERNEL_OK")
</pallas_src>

<mosaic_0001>
module attributes {stable_mosaic.version = 11 : i64} {
  func.func @c_net_kernel(%arg0: i32, %arg1: memref<1x32x256xf32, #tpu.memory_space<vmem>>, %arg2: memref<32x8xf32, #tpu.memory_space<vmem>>, %arg3: memref<1x8xf32, #tpu.memory_space<vmem>>, %arg4: memref<8x32xf32, #tpu.memory_space<vmem>>, %arg5: memref<1x32x256xf32, #tpu.memory_space<vmem>>) attributes {dimension_semantics = [#tpu.dimension_semantics<parallel>], iteration_bounds = array<i64: 2>, scalar_prefetch = 0 : i64, scratch_operands = 0 : i64, tpu.core_type = #tpu.core_type<tc>, window_params = [{transform_indices = @transform_0, window_bounds = array<i64: 1, 32, 256>}, {pipeline_mode = #tpu.pipeline_mode<synchronous>, transform_indices = @transform_1, window_bounds = array<i64: 32, 8>}, {pipeline_mode = #tpu.pipeline_mode<synchronous>, transform_indices = @transform_2, window_bounds = array<i64: 1, 8>}, {pipeline_mode = #tpu.pipeline_mode<synchronous>, transform_indices = @transform_3, window_bounds = array<i64: 8, 32>}, {transform_indices = @transform_4, window_bounds = array<i64: 1, 32, 256>}]} {
    %c0 = arith.constant 0 : index
    %c0_0 = arith.constant 0 : index
    %c0_1 = arith.constant 0 : index
    %0 = vector.load %arg1[%c0, %c0_0, %c0_1] : memref<1x32x256xf32, #tpu.memory_space<vmem>>, vector<1x32x256xf32>
    %cst = arith.constant dense<0.000000e+00> : vector<1x32xf32>
    %1 = vector.multi_reduction <add>, %0, %cst [2] : vector<1x32x256xf32> to vector<1x32xf32>
    %c0_2 = arith.constant 0 : index
    %c0_3 = arith.constant 0 : index
    %2 = vector.load %arg2[%c0_2, %c0_3] : memref<32x8xf32, #tpu.memory_space<vmem>>, vector<32x8xf32>
    %cst_4 = arith.constant dense<0.000000e+00> : vector<1x8xf32>
    %3 = tpu.matmul %1, %2, %cst_4 {dimension_numbers = #tpu.dot_dimension_numbers<[1], [0], [0], [1], [0, 0, 1, 1], [], []>} : vector<1x32xf32>, vector<32x8xf32>, vector<1x8xf32> -> vector<1x8xf32>
    %c0_5 = arith.constant 0 : index
    %c0_6 = arith.constant 0 : index
    %4 = vector.load %arg3[%c0_5, %c0_6] : memref<1x8xf32, #tpu.memory_space<vmem>>, vector<1x8xf32>
    %5 = arith.addf %3, %4 : vector<1x8xf32>
    %cst_7 = arith.constant 0.000000e+00 : f32
    %6 = vector.broadcast %cst_7 : f32 to vector<1x8xf32>
    %7 = arith.maximumf %5, %6 : vector<1x8xf32>
    %c0_8 = arith.constant 0 : index
    %c0_9 = arith.constant 0 : index
    %8 = vector.load %arg4[%c0_8, %c0_9] : memref<8x32xf32, #tpu.memory_space<vmem>>, vector<8x32xf32>
    %cst_10 = arith.constant dense<0.000000e+00> : vector<1x32xf32>
    %9 = tpu.matmul %7, %8, %cst_10 {dimension_numbers = #tpu.dot_dimension_numbers<[1], [0], [0], [1], [0, 0, 1, 1], [], []>} : vector<1x8xf32>, vector<8x32xf32>, vector<1x32xf32> -> vector<1x32xf32>
    %10 = arith.negf %9 : vector<1x32xf32>
    %11 = math.exp %10 : vector<1x32xf32>
    %cst_11 = arith.constant 1.000000e+00 : f32
    %12 = vector.broadcast %cst_11 : f32 to vector<1x32xf32>
    %13 = arith.addf %12, %11 : vector<1x32xf32>
    %14 = arith.divf %12, %13 : vector<1x32xf32>
    %15 = vector.shape_cast %14 : vector<1x32xf32> to vector<1x32x1xf32>
    %16 = vector.broadcast %15 : vector<1x32x1xf32> to vector<1x32x256xf32>
    %17 = arith.mulf %0, %16 : vector<1x32x256xf32>
    %c0_12 = arith.constant 0 : index
    %c0_13 = arith.constant 0 : index
    %c0_14 = arith.constant 0 : index
    %18 = vector.load %arg5[%c0_12, %c0_13, %c0_14] : memref<1x32x256xf32, #tpu.memory_space<vmem>>, vector<1x32x256xf32>
    tpu.vector_store %arg5[%c0_12, %c0_13, %c0_14], %17 {strides = array<i32>} : memref<1x32x256xf32, #tpu.memory_space<vmem>>, vector<1x32x256xf32>,
    return
  }
  func.func @transform_0(%arg0: i32) -> (i32, i32, i32) {
    %c0_i32 = arith.constant 0 : i32
    %c0_i32_0 = arith.constant 0 : i32
    %c0_i32_1 = arith.constant 0 : i32
    return %arg0, %c0_i32, %c0_i32_0 : i32, i32, i32
  }
  func.func @transform_1(%arg0: i32) -> (i32, i32) {
    %c0_i32 = arith.constant 0 : i32
    %c0_i32_0 = arith.constant 0 : i32
    %c0_i32_1 = arith.constant 0 : i32
    return %c0_i32, %c0_i32_0 : i32, i32
  }
  func.func @transform_2(%arg0: i32) -> (i32, i32) {
    %c0_i32 = arith.constant 0 : i32
    %c0_i32_0 = arith.constant 0 : i32
    %c0_i32_1 = arith.constant 0 : i32
    return %c0_i32, %c0_i32_0 : i32, i32
  }
  func.func @transform_3(%arg0: i32) -> (i32, i32) {
    %c0_i32 = arith.constant 0 : i32
    %c0_i32_0 = arith.constant 0 : i32
    %c0_i32_1 = arith.constant 0 : i32
    return %c0_i32, %c0_i32_0 : i32, i32
  }
  func.func @transform_4(%arg0: i32) -> (i32, i32, i32) {
    %c0_i32 = arith.constant 0 : i32
    %c0_i32_0 = arith.constant 0 : i32
    %c0_i32_1 = arith.constant 0 : i32
    return %arg0, %c0_i32, %c0_i32_0 : i32, i32, i32
  }
}

</mosaic_0001>

<bundles_post_ra>
// kernel: tpu_custom_call.1
= control target key start
LH: loop header
LB: loop body
LE: loop exit
PB: predicated region body
PF: predicated region fallthrough
CT: control target
= control target key end

     0   :  { %9 = vsyncpa [#allocation3], 0  ;;  %s982_s0 = inlined_call_operand.hbm [shape: f32[2,32,256], index: 0, kind: input, shape index: {}]   ;;  %s983_s1 = inlined_call_operand.vmem [shape: f32[32,8], index: 1, kind: input, shape index: {}]   ;;  %s984_s2 = inlined_call_operand.vmem [shape: f32[1,8], index: 2, kind: input, shape index: {}]   ;;  %s985_s3 = inlined_call_operand.vmem [shape: f32[8,32], index: 3, kind: input, shape index: {}]   ;;  %s986_s4 = inlined_call_operand.hbm [shape: f32[2,32,256], index: 4, kind: output, shape index: {}]  }
   0x1   :  { %11 = vsyncpa [#allocation3 + $0x1], 0 }
   0x2   :  { %12 = vsyncpa [#allocation4], 0 }
   0x3   :  { %14 = vsyncpa [#allocation4 + $0x1], 0  ;;  %s774_s15 = smov 0   ;;  %s776_s16 = smov 0  }
   0x4   :  { %s778_s17 = smov 0   ;;  %s780_s18 = smov 0  }
   0x5 LB: > { %s795_s19 = sadd.s32 4294967295, %s739_s18   ;;  %s549_s20 = sadd.s32 4294967294, %s739_s18   ;;  %s739_s18 = sphi %s780_s18, %s1001_s18   ;;  %s735_s17 = sphi %s778_s17, %s1000_s17   ;;  %s731_s16 = sphi %s776_s16, %s999_s16   ;;  %s727_s15 = sphi %s774_s15, %s998_s15  }
   0x6   : > { %s799_s21 = sadd.s32 1, %s739_s18   ;;  %s27_s22 = sadd.s32 1, %s735_s17 }
   0x7   : > { %s24_s23 = ssub.s32 %s739_s18, %s799_s21  ;;  %p34_p0 = scmp.ne.s32.totalorder %s735_s17, %s731_s16 }
   0x8   : > { %p25_p1 = scmp.eq.s32.totalorder %s24_s23, 0  ;;  %p35_p2 = scmp.eq.s32.totalorder %s739_s18, 0 }
   0x9   : > { %p40_p3 = scmp.ne.s32.totalorder %s731_s16, %s727_s15  ;;  %p41_p4 = scmp.eq.s32.totalorder %s795_s19, 0 }
   0xa   : > { %s811_s24 = scalar_select %p25_p1, %s735_s17, %s27_s22  }
   0xb   : > { %p813_p5 = por %p35_p2, %p34_p0  ;;  %p817_p6 = por %p41_p4, %p40_p3 }
   0xc   : > { %p127_p7 = scmp.eq.s32.totalorder %s795_s19, 1  ;;  %p133_p8 = scmp.eq.s32.totalorder %s549_s20, 1 }
   0xd   : > { %s990_s26 = scalar_select %p817_p6, 1, 0 }
   0xe   : > { %p603_p10 = scmp.lt.s32.totalorder %s739_s18, 2  ;;  %p824_p11 = por %p127_p7, %p34_p0 }
   0xf   : > { %p828_p12 = por %p133_p8, %p40_p3  ;;  %s162_s29 = sand.u32 1, %s735_s17  }
  0x10   : > { %s991_s27 = scalar_select %p824_p11, 1, 0 }
  0x11   : > { %s992_s28 = scalar_select %p828_p12, 1, 0 }
  0x12   : > { %s566_s30 = sshll.u32 %s739_s18, 10  ;;  %s552_s5 = sshll.u32 %s162_s29, 6 }
  0x13   : > { %s837_s8 = scalar_lea.hbm %s982_s0, %s566_s30  ;;  %s166_s9 = scalar_lea.vmem [#allocation2], %s552_s5 }
  0x14   : > { %s173_s10 = sshll.u32 %s166_s9, 4  ;;  %p841_p13 = pnand %p603_p10, %p813_p5  ;;  %s845_s10 = int_to_ptr.vmem [resolvable:$true] %s173_s10 }
  0x15   : > { %s847_s12 = scalar_lea.sflag [#allocation3], %s162_s29  ;;  %s647_s13 = scalar_lea.hbm %s837_s8, 1024 }
  0x16   : > { %p648_p0 = scmp.ne.s32.totalorder %s837_s8, %s647_s13  ;;  %p649_p1 = pneg %p841_p13 }
  0x17   : > { %s652_s22 = scalar_lea.hbm %s982_s0, 2048  ;;  %p653_p4 = scmp.lt.s32.totalorder %s837_s8, %s982_s0 }
  0x18   : > { %p650_p2 = pnand %p649_p1, %p648_p0  ;;  %p654_p5 = scmp.lt.s32.totalorder %s652_s22, %s647_s13 }
  0x1a   : > { %p651_p3 = pneg %p650_p2  ;;  %p655_p7 = por %p654_p5, %p653_p4 }
  0x1c   : > { %p656_p8 = pnand %p655_p7, %p651_p3 }
  0x1e   : > { %659 = shalt.err (!%p656_p8)
}
  0x1f   : > { %s660_s29 = scalar_lea.vmem %s845_s10, 1024  ;;  %s741_s30 = smov [#allocation2]  }
  0x20   : > { %p661_p10 = scmp.ne.s32.totalorder %s845_s10, %s660_s29  ;;  %s665_s5 = sshll.u32 %s741_s30, 4  ;;  %s666_s5 = int_to_ptr.vmem [resolvable:$false] %s665_s5 }
  0x21   : > { %s667_s6 = scalar_lea.vmem %s666_s5, 2048  ;;  %p668_p2 = scmp.lt.s32.totalorder %s845_s10, %s666_s5 }
  0x22   : > { %p663_p9 = pnand %p661_p10, %p649_p1  ;;  %p669_p12 = scmp.lt.s32.totalorder %s667_s6, %s660_s29 }
  0x24   : > { %p664_p0 = pneg %p663_p9  ;;  %p670_p11 = por %p669_p12, %p668_p2 }
  0x26   : > { %p671_p6 = pnand %p670_p11, %p664_p0 }
  0x28   : > { %674 = shalt.err (!%p671_p6)
}
  0x29   : > { %s742_s7 = smov 256   ;;  %s743_s9 = smov 16  }
  0x2a   : > { %598 = dma.hbm_to_vmem [thread:$0]  (!%p841_p13), %s837_s8, 1024, %s845_s10, %s847_s12, %s742_s7, %s742_s7, %s743_s9  }
  0x2b   : > { %p555_p9 = scmp.ge.s32.totalorder %s739_s18, 1  ;;  %p181_p1 = scmp.lt.s32.totalorder %s739_s18, 3 }
  0x2d   : > { %p182_p3 = pnand %p555_p9, %p181_p1 }
  0x2e   : > { %s871_s13 = sand.u32 (!%p182_p3), 1, %s731_s16   ;;  %p994_p6 = scmp.ne.s32.totalorder (!%p182_p3), %s990_s26, 0 }
  0x2f   : > { %185 = sbr.rel (%p182_p3) target bundleno = 766 (0x2fe), region = 36  ;;  %s556_s14 = sshll.u32 (!%p182_p3), %s871_s13, 6 }
  0x30   : > { %s188_s20 = scalar_lea.sflag (!%p182_p3), [#allocation3], %s871_s13  ;;  %s191_s22 = scalar_lea.vmem (!%p182_p3), [#allocation2], %s556_s14 }
  0x34   : > { %718 = dma.done.wait (%p994_p6), %s188_s20, 1024  }
  0x35   : > { %720 = vsyncadd (%p994_p6), %s188_s20, 4294966272  ;;  %v881_v0 = vld [vmem:[%s191_s22] sm:$0xff]  ;;  %v883_v1 = vld [vmem:[%s191_s22 + $0x8] sm:$0xff]  ;;  %v744_v12 = vmov 0.0   ;;  %vm745_vm0 = vmmov 0   ;;  %v245_v17 = vlaneseq  ;;  %vm256_vm1 = vcmask 130112  }
  0x36   : > { %v885_v2 = vld [vmem:[%s191_s22 + $0x20] sm:$0xff]  ;;  %v224_v3 = vadd.f32 %v883_v1, %v881_v0  ;;  %v889_v4 = vld [vmem:[%s191_s22 + $0x28] sm:$0xff]  ;;  %v891_v5 = vld [vmem:[%s191_s22 + $0x10] sm:$0xff]  ;;  %575 = vmatprep.subr.mxu0 %v744_v12  ;;  %586 = vmatprep.subr.mxu1 %v744_v12  ;;  %vm263_vm2 = vcmask 195712   ;;  %vm270_vm3 = vcmask 261312   ;;  %vm272_vm4 = vcmask 261120  }
  0x37   : > { %v893_v6 = vld [vmem:[%s191_s22 + $0x18] sm:$0xff]  ;;  %v230_v7 = vadd.f32 %v889_v4, %v885_v2  ;;  %v897_v8 = vld [vmem:[%s191_s22 + $0x30] sm:$0xff]  ;;  %v237_v15 = vld [vmem:[%s983_s1 + $0x8] sm:$0xff]  ;;  %583 = vmatprep.mubr.msk.f32.mxu0 %vm745_vm0, %v744_v12  ;;  %588 = vmatprep.mubr.msk.f32.mxu1 %vm745_vm0, %v744_v12  ;;  %v246_v18 = vand.u32 127, %v245_v17  ;;  %v248_v19 = vshrl.u32 %v245_v17, 7  ;;  %vm347_vm5 = vcmask 64512  }
  0x38   : > { %v899_v9 = vld [vmem:[%s191_s22 + $0x38] sm:$0xff]  ;;  %225 = vadd.xlane.f32.xlu0 %v224_v3  ;;  %v227_v10 = vadd.f32 %v893_v6, %v891_v5  ;;  %v238_v14 = vld [vmem:[%s983_s1 + $0x10] sm:$0xff]  ;;  %v236_v16 = vld [vmem:[%s983_s1] sm:$0xff]  ;;  %s215_s9 = scalar_lea.vmem [#allocation5], %s556_s14  ;;  %s567_s22 = sshll.u32 %s795_s19, 10 }
  0x39   : > { %231 = vadd.xlane.f32.xlu1 %v230_v7  ;;  %v233_v11 = vadd.f32 %v899_v9, %v897_v8  ;;  %v239_v13 = vld [vmem:[%s983_s1 + $0x18] sm:$0xff]  ;;  %v251_v20 = vadd.s32 4294967288, %v246_v18  ;;  %v258_v21 = vadd.s32 4294967280, %v246_v18  ;;  %v265_v22 = vadd.s32 4294967272, %v246_v18  ;;  %v346_v38 = vld [vmem:[%s985_s3] sm:$0xff]  ;;  %s476_s20 = sshll.u32 %s215_s9, 4  ;;  %s937_s8 = scalar_lea.hbm %s986_s4, %s567_s22  ;;  %s932_s20 = int_to_ptr.vmem [resolvable:$true] %s476_s20 }
  0x3a   : > { %576 = vmatpush3.msra.mxu0 %v239_v13  ;;  %v249_v24 = vsub.s32 %v246_v18, %v248_v19  ;;  %587 = vmatpush3.msra.mxu1 %v346_v38  ;;  %v240_v39 = vld [vmem:[%s984_s2] sm:$0x1]  ;;  %v429_v49 = vsub.s32 0, %v248_v19  ;;  %s463_s19 = scalar_lea.sflag [#allocation4], %s871_s13  ;;  %s675_s10 = scalar_lea.vmem %s932_s20, 1024 }
  0x3b   : > { %577 = vmatprep.subr.mxu0 %v744_v12  ;;  %v254_v26 = vsub.s32 %v251_v20, %v248_v19  ;;  %v261_v27 = vsub.s32 %v258_v21, %v248_v19  ;;  %v268_v28 = vsub.s32 %v265_v22, %v248_v19  ;;  %p676_p11 = scmp.ne.s32.totalorder %s932_s20, %s675_s10  ;;  %p995_p12 = scmp.ne.s32.totalorder %s991_s27, 0 }
  0x3c   : > { %228 = vadd.xlane.f32.xlu0 %v227_v10  ;;  %578 = vmatpush3.msra.mxu0 %v238_v14  ;;  %s746_s11 = smov [#allocation5]  }
  0x3d   : > { %234 = vadd.xlane.f32.xlu1 %v233_v11  ;;  %579 = vmatprep.subr.mxu0 %v744_v12  ;;  %p677_p13 = pnand %p676_p11, %p995_p12  ;;  %s679_s12 = sshll.u32 %s746_s11, 4  ;;  %s680_s12 = int_to_ptr.vmem [resolvable:$false] %s679_s12 }
  0x3e   : > { %580 = vmatpush3.msra.mxu0 %v237_v15  ;;  %s681_s23 = scalar_lea.vmem %s680_s12, 2048  ;;  %p682_p5 = scmp.lt.s32.totalorder %s932_s20, %s680_s12 }
  0x3f   : > { %581 = vmatprep.subr.mxu0 %v744_v12  ;;  %p678_p4 = pneg %p677_p13  ;;  %p683_p7 = scmp.lt.s32.totalorder %s681_s23, %s675_s10 }
  0x40   : > { %582 = vmatpush3.msra.mxu0 %v236_v16 }
  0x41   : > { %p684_p8 = por %p683_p7, %p682_p5 }
  0x43   : > { %p685_p10 = pnand %p684_p8, %p678_p4 }
  0xc1   : > { %v226_v23 = vpop.xlane.xlu0 %225 }
  0xc2   : > { %v232_v25 = vpop.xlane.xlu1 %231  ;;  %v250_v30 = vrot.slane %v226_v23, %v249_v24 }
  0xc3   : > { %v262_v33 = vrot.slane %v232_v25, %v261_v27 }
  0xc5   : > { %v229_v29 = vpop.xlane.xlu0 %228 }
  0xc6   : > { %v255_v31 = vrot.slane %v229_v29, %v254_v26  ;;  %v235_v32 = vpop.xlane.xlu1 %234 }
  0xc7   : > { %v269_v34 = vrot.slane %v235_v32, %v268_v28 }
  0xc8   : > { %v257_v35 = vsel %vm256_vm1, %v255_v31, %v250_v30 }
  0xc9   : > { %v264_v36 = vsel %vm263_vm2, %v262_v33, %v257_v35 }
  0xca   : > { %v271_v37 = vsel %vm270_vm3, %v269_v34, %v264_v36 }
  0xcb   : > { %584 = vmatmul.mubr.msk.f32.vlgmr.msra.gmra.mxu0 %vm272_vm4, %v271_v37 }
 0x18b   : > { %v341_v40 = vpop.f32.mrf.mxu0 }
 0x18c   : > { %v342_v41 = vadd.f32 %v341_v40, %v240_v39 }
 0x18d   : > { %v585_v42 = vpop.f32.mrf.mxu0 }
 0x18e   : > { %v345_v43 = vmax.f32 %v342_v41, 0.0 }
 0x190   : > { %589 = vmatmul.mubr.msk.f32.vlgmr.msra.gmra.mxu1 %vm347_vm5, %v345_v43 }
 0x250   : > { %v417_v44 = vpop.f32.mrf.mxu1 }
 0x251   : > { %v560_v45 = vmul.f32 -1.442695, %v417_v44 }
 0x252   : > { %v590_v46 = vpop.f32.mrf.mxu1 }
 0x253   : > { %643 = vpow2.f32 %v560_v45 }
 0x260   : > { %v644_v47 = vpop.eup %643 }
 0x261   : > { %v424_v48 = vadd.f32 1.0, %v644_v47 }
 0x263   : > { %645 = vrcp.f32 %v424_v48 }
 0x270   : > { %v646_v50 = vpop.eup %645 }
 0x271   : > { %v430_v51 = vrot.slane %v646_v50, %v429_v49 }
 0x273   : > { %436 = vbcast.lane.b32.xlu1 %v430_v51, 264  ;;  %432 = vbcast.lane.b32.xlu0 %v430_v51, 256 }
 0x277   : > { %440 = vbcast.lane.b32.xlu1 %v430_v51, 272 }
 0x27b   : > { %444 = vbcast.lane.b32.xlu1 %v430_v51, 280 }
 0x2e5   : > { %v437_v52 = vpop.permute.xlu1 %436  ;;  %v433_v53 = vpop.permute.xlu0 %432 }
 0x2e6   : > { %v448_v54 = vmul.f32 %v437_v52, %v891_v5  ;;  %v449_v55 = vmul.f32 %v437_v52, %v893_v6  ;;  %v446_v56 = vmul.f32 %v433_v53, %v881_v0  ;;  %v447_v57 = vmul.f32 %v433_v53, %v883_v1 }
 0x2e8   : > { %456 = vst [vmem:[%s215_s9 + $0x10] sm:$0xff] %v448_v54  ;;  %457 = vst [vmem:[%s215_s9 + $0x18] sm:$0xff] %v449_v55 }
 0x2e9   : > { %454 = vst [vmem:[%s215_s9] sm:$0xff] %v446_v56  ;;  %455 = vst [vmem:[%s215_s9 + $0x8] sm:$0xff] %v447_v57  ;;  %v441_v58 = vpop.permute.xlu1 %440 }
 0x2ea   : > { %v450_v59 = vmul.f32 %v441_v58, %v885_v2  ;;  %v451_v60 = vmul.f32 %v441_v58, %v889_v4 }
 0x2ec   : > { %458 = vst [vmem:[%s215_s9 + $0x20] sm:$0xff] %v450_v59  ;;  %459 = vst [vmem:[%s215_s9 + $0x28] sm:$0xff] %v451_v60 }
 0x2ed   : > { %v445_v61 = vpop.permute.xlu1 %444 }
 0x2ee   : > { %v452_v62 = vmul.f32 %v445_v61, %v897_v8  ;;  %v453_v63 = vmul.f32 %v445_v61, %v899_v9 }
 0x2f0   : > { %460 = vst [vmem:[%s215_s9 + $0x30] sm:$0xff] %v452_v62  ;;  %461 = vst [vmem:[%s215_s9 + $0x38] sm:$0xff] %v453_v63 }
 0x2f1   : > { %688 = shalt.err (!%p685_p10)
}
 0x2f2   : > { %s689_s25 = scalar_lea.hbm %s937_s8, 1024  ;;  %s693_s5 = scalar_lea.hbm %s986_s4, 2048 }
 0x2f3   : > { %p690_p0 = scmp.ne.s32.totalorder %s937_s8, %s689_s25  ;;  %p694_p1 = scmp.lt.s32.totalorder %s937_s8, %s986_s4 }
 0x2f4   : > { %p695_p3 = scmp.lt.s32.totalorder %s693_s5, %s689_s25 }
 0x2f5   : > { %p691_p2 = pnand %p690_p0, %p995_p12 }
 0x2f6   : > { %p696_p6 = por %p695_p3, %p694_p1 }
 0x2f7   : > { %p692_p9 = pneg %p691_p2 }
 0x2f9   : > { %p697_p11 = pnand %p696_p6, %p692_p9 }
 0x2fb   : > { %700 = shalt.err (!%p697_p11)
}
 0x2fc   : > { %s747_s9 = smov 256   ;;  %s748_s22 = smov 16  }
 0x2fd   : > { %593 = dma.vmem_to_hbm [thread:$0]  (%p995_p12), %s932_s20, 1024, %s937_s8, %s463_s19, %s747_s9, %s747_s9, %s748_s22  }
 0x2fe PF: > { %s491_s14 = sand.u32 1, %s727_s15   ;;  %p996_p13 = scmp.ne.s32.totalorder %s992_s28, 0 }
 0x2ff   : > { %p997_p4 = scmp.ge.s32.totalorder %s739_s18, 2  ;;  %s492_s26 = scalar_lea.sflag [#allocation4], %s491_s14 }
 0x301   : > { %p600_p5 = pnand %p997_p4, %p996_p13 }
 0x303   : > { %p601_p7 = pneg %p600_p5 }
 0x305   : > { %722 = dma.done.wait (%p601_p7), %s492_s26, 1024  }
 0x306   : > { %724 = vsyncadd (%p601_p7), %s492_s26, 4294966272  ;;  %p17_p8 = scmp.ge.s32.totalorder %s799_s21, 4   ;;  %s998_s15 = smov %s731_s16 }
 0x307   : > { %s999_s16 = smov %s735_s17  ;;  %s1000_s17 = smov %s811_s24 }
 0x308   : > { %s1001_s18 = smov %s799_s21  ;;  %19 = sbr.rel (!%p17_p8) target bundleno = 5 (0x5), region = 81 }
 0x30d   :  { %497 = vsyncpa [#allocation3], 1 }
 0x30e   :  { %499 = vsyncpa [#allocation3 + $0x1], 1 }
 0x30f   :  { %500 = vsyncpa [#allocation4], 1 }
 0x310   :  { %502 = vsyncpa [#allocation4 + $0x1], 1 }

</bundles_post_ra>
